<compile_context>
chip_gen: v6e
topology: v6e:2x2x1
jax: 0.10.0
libtpu: 0.0.40
codegen_flags: <defaults>
</compile_context>

<pallas_src>
import jax
import jax.numpy as jnp
from jax.experimental import pallas as pl
from jax.experimental.pallas import tpu as pltpu


def _round_up(a, b):
    return -(-a // b) * b


def _mcgcn_kernel(x_ref, adj_ref, w_ref, hw_ref, hb_ref, out_ref, acc_ref):
    c = pl.program_id(1)  # channel = reduction axis (innermost)

    @pl.when(c == 0)
    def _():
        acc_ref[...] = jnp.zeros_like(acc_ref)

    # support = x[c] @ W[c] : [N_pad, H_pad]   (bf16 operands, f32 accumulate)
    support = jnp.dot(
        x_ref[...], w_ref[...], preferred_element_type=jnp.float32
    ).astype(jnp.bfloat16)

    # row tile of (adj[c] @ support) : [TM, H_pad]
    ch = jnp.dot(adj_ref[...], support, preferred_element_type=jnp.float32)

    # relu + accumulate across channels into the resident f32 accumulator
    acc_ref[...] += jnp.maximum(ch, 0.0)

    @pl.when(c == pl.num_programs(1) - 1)
    def _():
        # hyper layer: combined @ hyper_w.T + b  (hyper_w pre-transposed on host)
        out_ref[...] = (
            jnp.dot(acc_ref[...], hw_ref[...], preferred_element_type=jnp.float32)
            + hb_ref[...]
        ).astype(out_ref.dtype)


def multi_channel_gcn(x, adjs, gc_w, hyper_w, hyper_b, *, tm=256):
    C, N, Din = x.shape
    H = gc_w.shape[-1]
    O = hyper_w.shape[0]

    LANE = 128
    # Row tile: multiple of 128, no larger than the (128-rounded) node count.
    TM = min(_round_up(max(tm, LANE), LANE), _round_up(N, LANE))
    N_pad = _round_up(N, TM)
    Din_p = _round_up(Din, LANE)
    H_p = _round_up(H, LANE)
    O_p = _round_up(O, LANE)
    n_tiles = N_pad // TM

    # Host-side zero-padding + dtype casts (bf16 matmul operands, f32 hyper params).
    x_p = jnp.pad(x, ((0, 0), (0, N_pad - N), (0, Din_p - Din))).astype(jnp.bfloat16)
    adj_p = jnp.pad(adjs, ((0, 0), (0, N_pad - N), (0, N_pad - N))).astype(jnp.bfloat16)
    w_p = jnp.pad(gc_w, ((0, 0), (0, Din_p - Din), (0, H_p - H))).astype(jnp.bfloat16)
    hw_t = jnp.pad(hyper_w.T, ((0, H_p - H), (0, O_p - O))).astype(jnp.float32)
    hb_p = jnp.pad(hyper_b.reshape(1, -1), ((0, 0), (0, O_p - O))).astype(jnp.float32)

    # VMEM budget (double-buffered bf16 inputs + f32 scratch/outputs) + headroom.
    vmem_needed = (
        2 * 2 * (N_pad * Din_p + TM * N_pad + Din_p * H_p)   # bf16 inputs, 2 bufs
        + 2 * 4 * (H_p * O_p + O_p)                          # hyper w / b (f32)
        + 4 * TM * H_p                                       # accumulator scratch
        + 2 * 4 * TM * O_p                                   # f32 output, 2 bufs
    )
    vmem_limit = int(min(max(vmem_needed + (4 << 20), 32 << 20), 64 << 20))

    cost = pl.CostEstimate(
        flops=(2 * C * n_tiles * N_pad * Din_p * H_p          # support (per row tile)
               + 2 * C * N_pad * N_pad * H_p                  # adjacency aggregation
               + 2 * N_pad * H_p * O_p),                      # hyper linear
        transcendentals=0,
        bytes_accessed=(2 * C * n_tiles * (N_pad * Din_p + Din_p * H_p)
                        + 2 * C * N_pad * N_pad
                        + 4 * (H_p * O_p + O_p)
                        + 4 * N_pad * O_p),
    )

    out_p = pl.pallas_call(
        _mcgcn_kernel,
        out_shape=jax.ShapeDtypeStruct((N_pad, O_p), jnp.float32),
        grid_spec=pltpu.PrefetchScalarGridSpec(
            num_scalar_prefetch=0,
            grid=(n_tiles, C),                                  # (row tiles, channels)
            in_specs=[
                pl.BlockSpec((None, N_pad, Din_p),
                             lambda i, c: (c, 0, 0)),           # x[c]   (full rows)
                pl.BlockSpec((None, TM, N_pad),
                             lambda i, c: (c, i, 0)),           # adj[c] row tile
                pl.BlockSpec((None, Din_p, H_p),
                             lambda i, c: (c, 0, 0)),           # W[c]
                pl.BlockSpec((H_p, O_p), lambda i, c: (0, 0)),  # hyper_w.T (resident)
                pl.BlockSpec((1, O_p), lambda i, c: (0, 0)),    # hyper_b   (resident)
            ],
            out_specs=pl.BlockSpec((TM, O_p), lambda i, c: (i, 0)),
            scratch_shapes=[pltpu.VMEM((TM, H_p), jnp.float32)],
        ),
        compiler_params=pltpu.CompilerParams(
            # Row tiles are independent (megacore-shardable);
            # the channel axis is the reduction, kept innermost.
            dimension_semantics=("parallel", "arbitrary"),
            vmem_limit_bytes=vmem_limit,
        ),
        cost_estimate=cost,
    )(x_p, adj_p, w_p, hw_t, hb_p)

    return out_p[:N, :O]


def _reference(x, adjs, gc_w, hyper_w, hyper_b):
    # pure-JAX f32 reference of the PyTorch forward
    ch = jax.nn.relu(jnp.einsum("cnm,cmi,cio->cno", adjs, x, gc_w))
    combined = ch.sum(axis=0)
    return combined @ hyper_w.T + hyper_b


if __name__ == "__main__":
    num_channels = 4
    N = 16            # number of graph nodes
    input_dim = 32
    hidden_dim = 32
    output_dim = 16

    key = jax.random.PRNGKey(0)
    kx, ka, kw, khw, khb = jax.random.split(key, 5)

    x = jax.random.normal(kx, (num_channels, N, input_dim), jnp.float32)
    adjs = jax.random.uniform(ka, (num_channels, N, N), jnp.float32)

    # Deterministic Xavier-uniform init for the per-channel GC weights.
    xav_bound = (6.0 / (input_dim + hidden_dim)) ** 0.5
    gc_w = jax.random.uniform(
        kw, (num_channels, input_dim, hidden_dim), jnp.float32,
        minval=-xav_bound, maxval=xav_bound)

    # Deterministic init for the hyper (Linear) layer.
    lin_bound = (1.0 / hidden_dim) ** 0.5
    hyper_w = jax.random.uniform(
        khw, (output_dim, hidden_dim), jnp.float32,
        minval=-lin_bound, maxval=lin_bound)
    hyper_b = jax.random.uniform(
        khb, (output_dim,), jnp.float32, minval=-lin_bound, maxval=lin_bound)

    out = multi_channel_gcn(x, adjs, gc_w, hyper_w, hyper_b)
    out = jax.block_until_ready(out)

    ref = _reference(x, adjs, gc_w, hyper_w, hyper_b)
    assert out.shape == (N, output_dim)
    # bf16 matmul operands (f32 accumulation) -> looser tolerance vs f32 reference.
    assert jnp.allclose(out, ref, atol=1e-1, rtol=1e-1), float(
        jnp.max(jnp.abs(out - ref)))

    print("KERNEL_OK")
</pallas_src>

<mosaic_0001>
module attributes {stable_mosaic.version = 11 : i64} {
  func.func @_mcgcn_kernel(%arg0: i32, %arg1: i32, %arg2: memref<1x128x128xbf16, #tpu.memory_space<vmem>>, %arg3: memref<1x128x128xbf16, #tpu.memory_space<vmem>>, %arg4: memref<1x128x128xbf16, #tpu.memory_space<vmem>>, %arg5: memref<128x128xf32, #tpu.memory_space<vmem>>, %arg6: memref<1x128xf32, #tpu.memory_space<vmem>>, %arg7: memref<128x128xf32, #tpu.memory_space<vmem>>, %arg8: memref<128x128xf32, #tpu.memory_space<vmem>>) attributes {dimension_semantics = [#tpu.dimension_semantics<parallel>, #tpu.dimension_semantics<arbitrary>], iteration_bounds = array<i64: 1, 4>, scalar_prefetch = 0 : i64, scratch_operands = 1 : i64, tpu.core_type = #tpu.core_type<tc>, window_params = [{transform_indices = @transform_0, window_bounds = array<i64: 1, 128, 128>}, {transform_indices = @transform_1, window_bounds = array<i64: 1, 128, 128>}, {transform_indices = @transform_2, window_bounds = array<i64: 1, 128, 128>}, {pipeline_mode = #tpu.pipeline_mode<synchronous>, transform_indices = @transform_3, window_bounds = array<i64: 128, 128>}, {pipeline_mode = #tpu.pipeline_mode<synchronous>, transform_indices = @transform_4, window_bounds = array<i64: 1, 128>}, {transform_indices = @transform_5, window_bounds = array<i64: 128, 128>}]} {
    %c0_i32 = arith.constant 0 : i32
    %0 = arith.cmpi eq, %arg1, %c0_i32 : i32
    %1 = arith.extui %0 : i1 to i32
    %c0_i32_0 = arith.constant 0 : i32
    %2 = arith.cmpi ne, %1, %c0_i32_0 : i32
    scf.if %2 {
      %cst_16 = arith.constant 0.000000e+00 : f32
      %20 = vector.broadcast %cst_16 : f32 to vector<128x128xf32>
      %c0_17 = arith.constant 0 : index
      %c0_18 = arith.constant 0 : index
      %21 = vector.load %arg8[%c0_17, %c0_18] : memref<128x128xf32, #tpu.memory_space<vmem>>, vector<128x128xf32>
      tpu.vector_store %arg8[%c0_17, %c0_18], %20 {strides = array<i32>} : memref<128x128xf32, #tpu.memory_space<vmem>>, vector<128x128xf32>,
    } else {
    }
    %c0 = arith.constant 0 : index
    %c0_1 = arith.constant 0 : index
    %c0_2 = arith.constant 0 : index
    %3 = vector.load %arg2[%c0, %c0_1, %c0_2] : memref<1x128x128xbf16, #tpu.memory_space<vmem>>, vector<1x128x128xbf16>
    %4 = vector.shape_cast %3 : vector<1x128x128xbf16> to vector<128x128xbf16>
    %c0_3 = arith.constant 0 : index
    %c0_4 = arith.constant 0 : index
    %c0_5 = arith.constant 0 : index
    %5 = vector.load %arg4[%c0_3, %c0_4, %c0_5] : memref<1x128x128xbf16, #tpu.memory_space<vmem>>, vector<1x128x128xbf16>
    %6 = vector.shape_cast %5 : vector<1x128x128xbf16> to vector<128x128xbf16>
    %cst = arith.constant dense<0.000000e+00> : vector<128x128xf32>
    %7 = tpu.matmul %4, %6, %cst {dimension_numbers = #tpu.dot_dimension_numbers<[1], [0], [0], [1], [0, 0, 1, 1], [], []>} : vector<128x128xbf16>, vector<128x128xbf16>, vector<128x128xf32> -> vector<128x128xf32>
    %8 = arith.truncf %7 : vector<128x128xf32> to vector<128x128xbf16>
    %c0_6 = arith.constant 0 : index
    %c0_7 = arith.constant 0 : index
    %c0_8 = arith.constant 0 : index
    %9 = vector.load %arg3[%c0_6, %c0_7, %c0_8] : memref<1x128x128xbf16, #tpu.memory_space<vmem>>, vector<1x128x128xbf16>
    %10 = vector.shape_cast %9 : vector<1x128x128xbf16> to vector<128x128xbf16>
    %cst_9 = arith.constant dense<0.000000e+00> : vector<128x128xf32>
    %11 = tpu.matmul %10, %8, %cst_9 {dimension_numbers = #tpu.dot_dimension_numbers<[1], [0], [0], [1], [0, 0, 1, 1], [], []>} : vector<128x128xbf16>, vector<128x128xbf16>, vector<128x128xf32> -> vector<128x128xf32>
    %c0_10 = arith.constant 0 : index
    %c0_11 = arith.constant 0 : index
    %12 = vector.load %arg8[%c0_10, %c0_11] : memref<128x128xf32, #tpu.memory_space<vmem>>, vector<128x128xf32>
    %cst_12 = arith.constant 0.000000e+00 : f32
    %13 = vector.broadcast %cst_12 : f32 to vector<128x128xf32>
    %14 = arith.maximumf %11, %13 : vector<128x128xf32>
    %15 = arith.addf %12, %14 : vector<128x128xf32>
    %c0_13 = arith.constant 0 : index
    %c0_14 = arith.constant 0 : index
    %16 = vector.load %arg8[%c0_13, %c0_14] : memref<128x128xf32, #tpu.memory_space<vmem>>, vector<128x128xf32>
    tpu.vector_store %arg8[%c0_13, %c0_14], %15 {strides = array<i32>} : memref<128x128xf32, #tpu.memory_space<vmem>>, vector<128x128xf32>,
    %c3_i32 = arith.constant 3 : i32
    %17 = arith.cmpi eq, %arg1, %c3_i32 : i32
    %18 = arith.extui %17 : i1 to i32
    %c0_i32_15 = arith.constant 0 : i32
    %19 = arith.cmpi ne, %18, %c0_i32_15 : i32
    scf.if %19 {
      %c0_16 = arith.constant 0 : index
      %c0_17 = arith.constant 0 : index
      %20 = vector.load %arg8[%c0_16, %c0_17] : memref<128x128xf32, #tpu.memory_space<vmem>>, vector<128x128xf32>
      %c0_18 = arith.constant 0 : index
      %c0_19 = arith.constant 0 : index
      %21 = vector.load %arg5[%c0_18, %c0_19] : memref<128x128xf32, #tpu.memory_space<vmem>>, vector<128x128xf32>
      %cst_20 = arith.constant dense<0.000000e+00> : vector<128x128xf32>
      %22 = tpu.matmul %20, %21, %cst_20 {dimension_numbers = #tpu.dot_dimension_numbers<[1], [0], [0], [1], [0, 0, 1, 1], [], []>} : vector<128x128xf32>, vector<128x128xf32>, vector<128x128xf32> -> vector<128x128xf32>
      %c0_21 = arith.constant 0 : index
      %c0_22 = arith.constant 0 : index
      %23 = vector.load %arg6[%c0_21, %c0_22] : memref<1x128xf32, #tpu.memory_space<vmem>>, vector<1x128xf32>
      %24 = vector.broadcast %23 : vector<1x128xf32> to vector<128x128xf32>
      %25 = arith.addf %22, %24 : vector<128x128xf32>
      %c0_23 = arith.constant 0 : index
      %c0_24 = arith.constant 0 : index
      %26 = vector.load %arg7[%c0_23, %c0_24] : memref<128x128xf32, #tpu.memory_space<vmem>>, vector<128x128xf32>
      tpu.vector_store %arg7[%c0_23, %c0_24], %25 {strides = array<i32>} : memref<128x128xf32, #tpu.memory_space<vmem>>, vector<128x128xf32>,
    } else {
    }
    return
  }
  func.func @transform_0(%arg0: i32, %arg1: i32) -> (i32, i32, i32) {
    %c0_i32 = arith.constant 0 : i32
    %c0_i32_0 = arith.constant 0 : i32
    %c0_i32_1 = arith.constant 0 : i32
    return %arg1, %c0_i32, %c0_i32_0 : i32, i32, i32
  }
  func.func @transform_1(%arg0: i32, %arg1: i32) -> (i32, i32, i32) {
    %c0_i32 = arith.constant 0 : i32
    %c0_i32_0 = arith.constant 0 : i32
    return %arg1, %arg0, %c0_i32 : i32, i32, i32
  }
  func.func @transform_2(%arg0: i32, %arg1: i32) -> (i32, i32, i32) {
    %c0_i32 = arith.constant 0 : i32
    %c0_i32_0 = arith.constant 0 : i32
    %c0_i32_1 = arith.constant 0 : i32
    return %arg1, %c0_i32, %c0_i32_0 : i32, i32, i32
  }
  func.func @transform_3(%arg0: i32, %arg1: i32) -> (i32, i32) {
    %c0_i32 = arith.constant 0 : i32
    %c0_i32_0 = arith.constant 0 : i32
    %c0_i32_1 = arith.constant 0 : i32
    return %c0_i32, %c0_i32_0 : i32, i32
  }
  func.func @transform_4(%arg0: i32, %arg1: i32) -> (i32, i32) {
    %c0_i32 = arith.constant 0 : i32
    %c0_i32_0 = arith.constant 0 : i32
    %c0_i32_1 = arith.constant 0 : i32
    return %c0_i32, %c0_i32_0 : i32, i32
  }
  func.func @transform_5(%arg0: i32, %arg1: i32) -> (i32, i32) {
    %c0_i32 = arith.constant 0 : i32
    %c0_i32_0 = arith.constant 0 : i32
    return %arg0, %c0_i32 : i32, i32
  }
}

</mosaic_0001>

<bundles_post_ra>
// kernel: tpu_custom_call.1
= control target key start
LH: loop header
LB: loop body
LE: loop exit
PB: predicated region body
PF: predicated region fallthrough
CT: control target
= control target key end

     0   :  { %s2008_s0 = inlined_call_operand.hbm [shape: bf16[4,128,128], index: 0, kind: input, shape index: {}]   ;;  %s2009_s1 = inlined_call_operand.hbm [shape: bf16[4,128,128], index: 1, kind: input, shape index: {}]   ;;  %s2010_s2 = inlined_call_operand.hbm [shape: bf16[4,128,128], index: 2, kind: input, shape index: {}]   ;;  %s2011_s3 = inlined_call_operand.hbm [shape: f32[128,128], index: 3, kind: input, shape index: {}]   ;;  %s2012_s4 = inlined_call_operand.vmem [shape: f32[1,128], index: 4, kind: input, shape index: {}]   ;;  %s2013_s5 = inlined_call_operand.hbm [shape: f32[128,128], index: 5, kind: output, shape index: {}]  }
   0x1   :  { %2019 = sst [smem:[#allocation17_spill]] %s2008_s0 }
   0x2   :  { %2020 = sst [smem:[#allocation18_spill]] %s2009_s1 }
   0x3   :  { %10 = vsyncpa [#allocation4], 0 }
   0x4   :  { %12 = vsyncpa [#allocation4 + $0x1], 0 }
   0x5   :  { %13 = vsyncpa [#allocation7], 0 }
   0x6   :  { %15 = vsyncpa [#allocation7 + $0x1], 0 }
   0x7   :  { %16 = vsyncpa [#allocation10], 0 }
   0x8   :  { %17 = vsyncpa [#allocation5], 0  ;;  %s1780_s18 = smov 0   ;;  %s1782_s19 = smov 0  }
   0x9   :  { %s1784_s20 = smov 0   ;;  %s1786_s21 = smov 0  }
   0xa   :  { %s1788_s22 = smov 0   ;;  %s1790_s23 = smov 0  }
   0xb LB: > { %s32_s24 = sadd.s32 1, %s1732_s22  ;;  %s42_s25 = sadd.s32 1, %s1724_s20  ;;  %s1736_s23 = sphi %s1790_s23, %s23_s23   ;;  %s1732_s22 = sphi %s1788_s22, %s2036_s22   ;;  %s1728_s21 = sphi %s1786_s21, %s2035_s21   ;;  %s1724_s20 = sphi %s1784_s20, %s2034_s20   ;;  %s1720_s19 = sphi %s1782_s19, %s2033_s19   ;;  %s1716_s18 = sphi %s1780_s18, %s2032_s18  }
   0xc   : > { %p33_p0 = scmp.ge.s32.totalorder %s32_s24, 4  ;;  %p49_p1 = scmp.ne.s32.totalorder %s1724_s20, %s1720_s19 }
   0xd   : > { %p50_p2 = scmp.eq.s32.totalorder %s1736_s23, 0  ;;  %p1455_p4 = scmp.lt.s32.totalorder %s1736_s23, 4 }
   0xe   : > { %s2038_s24 = smov (%p33_p0, %s32_s24), 0  ;;  %s217_s27 = sand.u32 1, %s1724_s20  }
   0xf   : > { %2021 = sst [smem:[#allocation16_spill]] %s2038_s24  ;;  %p51_p3 = por %p50_p2, %p49_p1 }
  0x10   : > { %s39_s26 = ssub.s32 %s1732_s22, %s2038_s24  ;;  %s1823_s28 = sshll.u32 %s217_s27, 6 }
  0x11   : > { %p40_p5 = scmp.eq.s32.totalorder %s39_s26, 0  ;;  %s1826_s29 = sshll.u32 %s1732_s22, 10 }
  0x12   : > { %p1828_p6 = pnand %p1455_p4, %p51_p3  ;;  %s238_s7 = sand.u32 1, %s1736_s23  }
  0x13   : > { %s1833_s6 = scalar_select %p40_p5, %s1724_s20, %s42_s25  }
  0x14   : > { %s2023_s1 = sld [smem:[#allocation18_spill]]  ;;  %s242_s11 = scalar_lea.vmem [#allocation6], %s1823_s28 }
  0x15   : > { %s251_s12 = sshll.u32 %s242_s11, 4  ;;  %s1841_s13 = scalar_lea.sflag [#allocation7], %s238_s7  ;;  %s252_s12 = int_to_ptr.vmem [resolvable:$true] %s251_s12 }
  0x16   : > { %p1542_p7 = pneg %p1828_p6  ;;  %s1553_s14 = scalar_lea.vmem %s252_s12, 1024 }
  0x17   : > { %p1554_p8 = scmp.ne.s32.totalorder %s252_s12, %s1553_s14  ;;  %s1738_s15 = smov [#allocation6]  }
  0x18   : > { %s1558_s16 = sshll.u32 %s1738_s15, 4  ;;  %s1559_s16 = int_to_ptr.vmem [resolvable:$false] %s1558_s16 }
  0x19   : > { %p1556_p9 = pnand %p1554_p8, %p1542_p7  ;;  %s1560_s17 = scalar_lea.vmem %s1559_s16, 2048 }
  0x1a   : > { %s250_s10 = scalar_lea.hbm %s2023_s1, %s1826_s29  ;;  %p1561_p11 = scmp.lt.s32.totalorder %s252_s12, %s1559_s16 }
  0x1b   : > { %p1557_p10 = pneg %p1556_p9  ;;  %p1562_p12 = scmp.lt.s32.totalorder %s1560_s17, %s1553_s14 }
  0x1d   : > { %p1563_p13 = por %p1562_p12, %p1561_p11 }
  0x1f   : > { %p1564_p0 = pnand %p1563_p13, %p1557_p10 }
  0x21   : > { %1567 = shalt.err (!%p1564_p0)
}
  0x22   : > { %s2014_s25 = smov 64   ;;  %s2016_s26 = smov 4  }
  0x23   : > { %1450 = dma.hbm_to_vmem [thread:$0]  (!%p1828_p6), %s250_s10, 1024, %s252_s12, %s1841_s13, %s2014_s25, %s2014_s25, %s2016_s26  }
  0x24   : > { %s1855_s7 = sadd.s32 4294967295, %s1736_s23   ;;  %p55_p1 = scmp.ne.s32.totalorder %s1720_s19, %s1716_s18 }
  0x25   : > { %p56_p2 = scmp.eq.s32.totalorder %s1855_s7, 0  ;;  %p1159_p3 = scmp.ge.s32.totalorder %s1736_s23, 1 }
  0x26   : > { %p188_p4 = scmp.lt.s32.totalorder %s1736_s23, 5  ;;  %s1741_s10 = smov [#allocation9]  }
  0x27   : > { %p1864_p5 = por %p56_p2, %p55_p1  ;;  %s200_s11 = sshll.u32 %s1741_s10, 4  ;;  %s201_s11 = int_to_ptr.vmem [resolvable:$true] %s200_s11 }
  0x28   : > { %p1868_p8 = pnand %p1159_p3, %p188_p4  ;;  %s2027_s0 = sld [smem:[#allocation17_spill]] }
  0x29   : > { %s221_s16 = scalar_lea.vmem [#allocation3], %s1823_s28  ;;  %s1579_s10 = scalar_lea.vmem %s201_s11, 2048 }
  0x2a   : > { %p1440_p9 = pneg %p1868_p8  ;;  %s228_s17 = sshll.u32 %s221_s16, 4  ;;  %s1885_s17 = int_to_ptr.vmem [resolvable:$true] %s228_s17 }
  0x2b   : > { %p1580_p12 = scmp.ne.s32.totalorder %s201_s11, %s1579_s10  ;;  %p1587_p1 = scmp.lt.s32.totalorder %s201_s11, %s201_s11 }
  0x2c   : > { %p1876_p10 = pnand %p1440_p9, %p56_p2  ;;  %p1588_p3 = scmp.lt.s32.totalorder %s1579_s10, %s1579_s10 }
  0x2e   : > { %p1570_p11 = pneg %p1876_p10  ;;  %p1589_p4 = por %p1588_p3, %p1587_p1 }
  0x30   : > { %p1582_p13 = pnand %p1580_p12, %p1570_p11 }
  0x32   : > { %p1583_p0 = pneg %p1582_p13 }
  0x34   : > { %p1590_p9 = pnand %p1589_p4, %p1583_p0 }
  0x36   : > { %1593 = shalt.err (!%p1590_p9)
}
  0x37   : > { %s1742_s25 = smov 128   ;;  %s1743_s12 = smov 8  }
  0x38   : > { %1443 = dma.hbm_to_vmem [thread:$0]  (!%p1876_p10), %s2011_s3, 2048, %s201_s11, [#allocation10], %s1742_s25, %s1742_s25, %s1743_s12  }
  0x39   : > { %s218_s15 = scalar_lea.sflag [#allocation4], %s217_s27  ;;  %s1607_s26 = scalar_lea.vmem %s1885_s17, 1024 }
  0x3a   : > { %p1608_p11 = scmp.ne.s32.totalorder %s1885_s17, %s1607_s26  ;;  %s1744_s10 = smov [#allocation3]  }
  0x3b   : > { %s1612_s1 = sshll.u32 %s1744_s10, 4  ;;  %s1613_s1 = int_to_ptr.vmem [resolvable:$false] %s1612_s1 }
  0x3c   : > { %p1610_p12 = pnand %p1608_p11, %p1542_p7  ;;  %s1614_s24 = scalar_lea.vmem %s1613_s1, 2048 }
  0x3d   : > { %p1615_p0 = scmp.lt.s32.totalorder %s1885_s17, %s1613_s1  ;;  %p1616_p1 = scmp.lt.s32.totalorder %s1614_s24, %s1607_s26 }
  0x3e   : > { %p1611_p13 = pneg %p1610_p12 }
  0x3f   : > { %p1617_p3 = por %p1616_p1, %p1615_p0 }
  0x41   : > { %p1618_p4 = pnand %p1617_p3, %p1611_p13 }
  0x43   : > { %1621 = shalt.err (!%p1618_p4)
}
  0x44   : > { %s2028_s25 = smov 4   ;;  %s2029_s11 = smov 64  }
  0x45   : > { %s2030_s12 = scalar_lea.hbm %s2027_s0, %s1826_s29  ;;  %s271_s26 = scalar_lea.hbm %s2010_s2, %s1826_s29 }
  0x46   : > { %1447 = dma.hbm_to_vmem [thread:$0]  (!%p1828_p6), %s2030_s12, 1024, %s1885_s17, %s218_s15, %s2029_s11, %s2029_s11, %s2028_s25  }
  0x47   : > { %s265_s14 = scalar_lea.vmem [#allocation8], %s1823_s28  ;;  %s1745_s27 = smov [#allocation8]  }
  0x48   : > { %s272_s16 = sshll.u32 %s265_s14, 4  ;;  %s1640_s18 = sshll.u32 %s1745_s27, 4  ;;  %s273_s16 = int_to_ptr.vmem [resolvable:$true] %s272_s16  ;;  %s1641_s18 = int_to_ptr.vmem [resolvable:$false] %s1640_s18 }
  0x49   : > { %s1635_s10 = scalar_lea.vmem %s273_s16, 1024  ;;  %s1642_s0 = scalar_lea.vmem %s1641_s18, 2048 }
  0x4a   : > { %p1636_p10 = scmp.ne.s32.totalorder %s273_s16, %s1635_s10  ;;  %p1643_p12 = scmp.lt.s32.totalorder %s273_s16, %s1641_s18 }
  0x4b   : > { %p1644_p13 = scmp.lt.s32.totalorder %s1642_s0, %s1635_s10 }
  0x4c   : > { %p1638_p9 = pnand %p1636_p10, %p1542_p7 }
  0x4d   : > { %p1645_p0 = por %p1644_p13, %p1643_p12 }
  0x4e   : > { %p1639_p11 = pneg %p1638_p9 }
  0x50   : > { %p1646_p1 = pnand %p1645_p0, %p1639_p11 }
  0x52   : > { %1649 = shalt.err (!%p1646_p1)
}
  0x53   : > { %1453 = dma.hbm_to_vmem [thread:$0]  (!%p1828_p6), %s271_s26, 1024, %s273_s16, %s1841_s13, %s2029_s11, %s2029_s11, %s2028_s25  }
  0x54   : > { %284 = sbr.rel (%p1868_p8) target bundleno = 887 (0x377), region = 40  ;;  %s286_s28 = sand.u32 (!%p1868_p8), 1, %s1720_s19  }
  0x55   : > { %s1172_s29 = sshll.u32 (!%p1868_p8), %s286_s28, 6  ;;  %s287_s15 = scalar_lea.sflag (!%p1868_p8), [#allocation4], %s286_s28 }
  0x56   : > { %s1930_s17 = scalar_lea.vmem (!%p1868_p8), [#allocation3], %s1172_s29 }
  0x59   : > { %1699 = dma.done.wait (%p1864_p5), %s287_s15, 1024  }
  0x5a   : > { %1701 = vsyncadd (%p1864_p5), %s287_s15, 4294966272  ;;  %s295_s0 = sand.u32 1, %s1855_s7   ;;  %s1937_s13 = scalar_lea.vmem [#allocation6], %s1172_s29 }
  0x5b   : > { %s296_s30 = scalar_lea.sflag [#allocation7], %s295_s0 }
  0x5c   : > { %1703 = dma.done.wait (%p1864_p5), %s296_s30, 2048  }
  0x5d   : > { %1705 = vsyncadd (%p1864_p5), %s296_s30, 4294965248  ;;  %s1943_s9 = scalar_lea.vmem [#allocation8], %s1172_s29 }
  0x5e   : > { %1707 = dma.done.wait (%p56_p2), [#allocation10], 2048  }
  0x5f   : > { %1709 = vsyncadd (%p56_p2), [#allocation10], 4294965248  ;;  %p1176_p6 = scmp.ne.s32.totalorder %s1728_s21, 0 }
  0x61   : > { %350 = sbr.rel (%p1176_p6) target bundleno = 111 (0x6f), region = 60 }
  0x66   : > { %v1746_v0 = vmov 0.0  }
  0x67   : > { %351 = vst [vmem:[#allocation2 + $0x30] sm:$0xff] %v1746_v0  ;;  %352 = vst [vmem:[#allocation2] sm:$0xff] %v1746_v0 }
  0x68   : > { %353 = vst [vmem:[#allocation2 + $0x58] sm:$0xff] %v1746_v0  ;;  %354 = vst [vmem:[#allocation2 + $0x18] sm:$0xff] %v1746_v0 }
  0x69   : > { %355 = vst [vmem:[#allocation2 + $0x50] sm:$0xff] %v1746_v0  ;;  %356 = vst [vmem:[#allocation2 + $0x68] sm:$0xff] %v1746_v0 }
  0x6a   : > { %357 = vst [vmem:[#allocation2 + $0x8] sm:$0xff] %v1746_v0  ;;  %358 = vst [vmem:[#allocation2 + $0x48] sm:$0xff] %v1746_v0 }
  0x6b   : > { %359 = vst [vmem:[#allocation2 + $0x40] sm:$0xff] %v1746_v0  ;;  %360 = vst [vmem:[#allocation2 + $0x20] sm:$0xff] %v1746_v0 }
  0x6c   : > { %361 = vst [vmem:[#allocation2 + $0x10] sm:$0xff] %v1746_v0  ;;  %362 = vst [vmem:[#allocation2 + $0x38] sm:$0xff] %v1746_v0 }
  0x6d   : > { %363 = vst [vmem:[#allocation2 + $0x60] sm:$0xff] %v1746_v0  ;;  %364 = vst [vmem:[#allocation2 + $0x70] sm:$0xff] %v1746_v0 }
  0x6e   : > { %365 = vst [vmem:[#allocation2 + $0x78] sm:$0xff] %v1746_v0  ;;  %366 = vst [vmem:[#allocation2 + $0x28] sm:$0xff] %v1746_v0 }
  0x6f PF: > { %v1516_v1 = vld [vmem:[%s1943_s9 + $0x38] sm:$0xff]   ;;  %v1517_v2 = vld [vmem:[%s1943_s9 + $0x30] sm:$0xff]   ;;  %v1518_v3 = vld [vmem:[%s1943_s9 + $0x28] sm:$0xff]   ;;  %p1201_p7 = scmp.ne.s32.totalorder %s1728_s21, 3 }
  0x70   : > { %1274 = vmatprep.subr.bf16.mxu0 %v1516_v1  ;;  %v1519_v4 = vld [vmem:[%s1943_s9 + $0x20] sm:$0xff]   ;;  %v1520_v6 = vld [vmem:[%s1943_s9 + $0x18] sm:$0xff]   ;;  %v1521_v7 = vld [vmem:[%s1943_s9 + $0x10] sm:$0xff]  }
  0x71   : > { %1275 = vmatpush3.bf16.msra.mxu0 %v1516_v1  ;;  %v1524_v5 = vld [vmem:[%s1930_s17] sm:$0xff]   ;;  %v1522_v8 = vld [vmem:[%s1943_s9 + $0x8] sm:$0xff]   ;;  %v1526_v11 = vld [vmem:[%s1930_s17 + $0x10] sm:$0xff]  }
  0x72   : > { %1276 = vmatprep.subr.bf16.mxu0 %v1517_v2  ;;  %1290 = vmatprep.mubr.bf16.mxu0 %v1524_v5  ;;  %v1523_v9 = vld [vmem:[%s1943_s9] sm:$0xff]   ;;  %v1525_v10 = vld [vmem:[%s1930_s17 + $0x8] sm:$0xff]   ;;  %v1527_v12 = vld [vmem:[%s1930_s17 + $0x18] sm:$0xff]  }
  0x73   : > { %v1528_v13 = vld [vmem:[%s1930_s17 + $0x20] sm:$0xff]   ;;  %v1529_v14 = vld [vmem:[%s1930_s17 + $0x28] sm:$0xff]   ;;  %v1530_v15 = vld [vmem:[%s1930_s17 + $0x30] sm:$0xff]  }
  0x74   : > { %v1531_v16 = vld [vmem:[%s1930_s17 + $0x38] sm:$0xff]   ;;  %v1532_v17 = vld [vmem:[%s1937_s13] sm:$0xff]   ;;  %v1533_v42 = vld [vmem:[%s1937_s13 + $0x8] sm:$0xff]  }
  0x75   : > { %1277 = vmatpush3.bf16.msra.mxu0 %v1517_v2  ;;  %1322 = vmatprep.mubr.bf16.mxu1 %v1532_v17  ;;  %v1534_v43 = vld [vmem:[%s1937_s13 + $0x10] sm:$0xff]   ;;  %v1535_v44 = vld [vmem:[%s1937_s13 + $0x18] sm:$0xff]   ;;  %v1536_v45 = vld [vmem:[%s1937_s13 + $0x20] sm:$0xff]  }
  0x76   : > { %1278 = vmatprep.subr.bf16.mxu0 %v1518_v3  ;;  %v1537_v46 = vld [vmem:[%s1937_s13 + $0x28] sm:$0xff]   ;;  %v1538_v47 = vld [vmem:[%s1937_s13 + $0x30] sm:$0xff]   ;;  %v1539_v48 = vld [vmem:[%s1937_s13 + $0x38] sm:$0xff]  }
  0x77   : > { %v763_v50 = vld [vmem:[#allocation2 + $0x58] sm:$0xff]  ;;  %v761_v53 = vld [vmem:[#allocation2 + $0x30] sm:$0xff]  ;;  %v762_v61 = vld [vmem:[#allocation2] sm:$0xff] }
  0x78   : > { %v764_v57 = vld [vmem:[#allocation2 + $0x18] sm:$0xff]  ;;  %v767_v1 = vld [vmem:[#allocation2 + $0x8] sm:$0xff]  ;;  %v765_v5 = vld [vmem:[#allocation2 + $0x50] sm:$0xff] }
  0x79   : > { %1279 = vmatpush3.bf16.msra.mxu0 %v1518_v3  ;;  %v771_v17 = vld [vmem:[#allocation2 + $0x10] sm:$0xff] }
  0x7a   : > { %1280 = vmatprep.subr.bf16.mxu0 %v1519_v4 }
  0x7d   : > { %1281 = vmatpush3.bf16.msra.mxu0 %v1519_v4 }
  0x7e   : > { %1282 = vmatprep.subr.bf16.mxu0 %v1520_v6 }
  0x81   : > { %1283 = vmatpush3.bf16.msra.mxu0 %v1520_v6 }
  0x82   : > { %1284 = vmatprep.subr.bf16.mxu0 %v1521_v7 }
  0x85   : > { %1285 = vmatpush3.bf16.msra.mxu0 %v1521_v7 }
  0x86   : > { %1286 = vmatprep.subr.bf16.mxu0 %v1522_v8 }
  0x89   : > { %1287 = vmatpush3.bf16.msra.mxu0 %v1522_v8 }
  0x8a   : > { %1288 = vmatprep.subr.bf16.mxu0 %v1523_v9 }
  0x8d   : > { %1289 = vmatpush3.bf16.msra.mxu0 %v1523_v9  ;;  %v768_v9 = vld [vmem:[#allocation2 + $0x48] sm:$0xff] }
  0x90   : > { %1291 = vmatmul.mubr.bf16.vlgmr.msra.gmra.mxu0 %v1525_v10 }
  0x91   : > { %1294 = vmatprep.mubr.bf16.mxu0 %v1526_v11 }
  0x98   : > { %1295 = vmatmul.mubr.bf16.gmra.mxu0 %v1527_v12 }
  0x99   : > { %1298 = vmatprep.mubr.bf16.mxu0 %v1528_v13  ;;  %v766_v13 = vld [vmem:[#allocation2 + $0x68] sm:$0xff] }
  0xa0   : > { %1299 = vmatmul.mubr.bf16.gmra.mxu0 %v1529_v14 }
  0xa1   : > { %1302 = vmatprep.mubr.bf16.mxu0 %v1530_v15 }
  0xa8   : > { %1303 = vmatmul.mubr.bf16.gmra.mxu0 %v1531_v16 }
 0x150   : > { %v1292_v18 = vpop.f32.mrf.mxu0 }
 0x152   : > { %v529_v19 = vpop.f32.mrf.mxu0 }
 0x154   : > { %v1293_v20 = vpop.f32.mrf.mxu0 }
 0x155   : > { %v593_v40 = vpack.c.bf16 %v1293_v20, %v1292_v18 }
 0x156   : > { %v532_v21 = vpop.f32.mrf.mxu0 }
 0x157   : > { %v592_v41 = vpack.c.bf16 %v532_v21, %v529_v19  ;;  %v769_v21 = vld [vmem:[#allocation2 + $0x40] sm:$0xff] }
 0x158   : > { %v1296_v22 = vpop.f32.mrf.mxu0 }
 0x15a   : > { %v545_v23 = vpop.f32.mrf.mxu0 }
 0x15c   : > { %v1297_v24 = vpop.f32.mrf.mxu0 }
 0x15d   : > { %v595_v38 = vpack.c.bf16 %v1297_v24, %v1296_v22 }
 0x15e   : > { %v548_v25 = vpop.f32.mrf.mxu0 }
 0x15f   : > { %v594_v39 = vpack.c.bf16 %v548_v25, %v545_v23  ;;  %v772_v25 = vld [vmem:[#allocation2 + $0x38] sm:$0xff] }
 0x160   : > { %v1300_v26 = vpop.f32.mrf.mxu0 }
 0x162   : > { %v561_v27 = vpop.f32.mrf.mxu0 }
 0x164   : > { %v1301_v28 = vpop.f32.mrf.mxu0 }
 0x165   : > { %v597_v36 = vpack.c.bf16 %v1301_v28, %v1300_v26 }
 0x166   : > { %v564_v29 = vpop.f32.mrf.mxu0 }
 0x167   : > { %v596_v37 = vpack.c.bf16 %v564_v29, %v561_v27  ;;  %v770_v29 = vld [vmem:[#allocation2 + $0x20] sm:$0xff] }
 0x168   : > { %v1304_v30 = vpop.f32.mrf.mxu0 }
 0x16a   : > { %v577_v31 = vpop.f32.mrf.mxu0 }
 0x16c   : > { %v1305_v32 = vpop.f32.mrf.mxu0 }
 0x16d   : > { %v599_v33 = vpack.c.bf16 %v1305_v32, %v1304_v30 }
 0x16e   : > { %v580_v34 = vpop.f32.mrf.mxu0 }
 0x16f   : > { %v598_v35 = vpack.c.bf16 %v580_v34, %v577_v31  ;;  %1306 = vmatprep.subr.bf16.mxu1 %v599_v33 }
 0x170   : > { %1307 = vmatpush3.bf16.msra.mxu1 %v599_v33  ;;  %v775_v33 = vld [vmem:[#allocation2 + $0x78] sm:$0xff] }
 0x171   : > { %1308 = vmatprep.subr.bf16.mxu1 %v598_v35 }
 0x174   : > { %1309 = vmatpush3.bf16.msra.mxu1 %v598_v35 }
 0x175   : > { %1310 = vmatprep.subr.bf16.mxu1 %v597_v36 }
 0x178   : > { %1311 = vmatpush3.bf16.msra.mxu1 %v597_v36 }
 0x179   : > { %1312 = vmatprep.subr.bf16.mxu1 %v596_v37 }
 0x17c   : > { %1313 = vmatpush3.bf16.msra.mxu1 %v596_v37  ;;  %v773_v37 = vld [vmem:[#allocation2 + $0x60] sm:$0xff] }
 0x17d   : > { %1314 = vmatprep.subr.bf16.mxu1 %v595_v38 }
 0x180   : > { %1315 = vmatpush3.bf16.msra.mxu1 %v595_v38 }
 0x181   : > { %1316 = vmatprep.subr.bf16.mxu1 %v594_v39 }
 0x184   : > { %1317 = vmatpush3.bf16.msra.mxu1 %v594_v39 }
 0x185   : > { %1318 = vmatprep.subr.bf16.mxu1 %v593_v40 }
 0x188   : > { %1319 = vmatpush3.bf16.msra.mxu1 %v593_v40 }
 0x189   : > { %1320 = vmatprep.subr.bf16.mxu1 %v592_v41 }
 0x18c   : > { %1321 = vmatpush3.bf16.msra.mxu1 %v592_v41  ;;  %v776_v41 = vld [vmem:[#allocation2 + $0x28] sm:$0xff] }
 0x18f   : > { %1323 = vmatmul.mubr.bf16.vlgmr.msra.gmra.mxu1 %v1533_v42 }
 0x190   : > { %1326 = vmatprep.mubr.bf16.mxu1 %v1534_v43 }
 0x197   : > { %1327 = vmatmul.mubr.bf16.gmra.mxu1 %v1535_v44 }
 0x198   : > { %1330 = vmatprep.mubr.bf16.mxu1 %v1536_v45  ;;  %v774_v45 = vld [vmem:[#allocation2 + $0x70] sm:$0xff] }
 0x19f   : > { %1331 = vmatmul.mubr.bf16.gmra.mxu1 %v1537_v46 }
 0x1a0   : > { %1334 = vmatprep.mubr.bf16.mxu1 %v1538_v47 }
 0x1a7   : > { %1335 = vmatmul.mubr.bf16.gmra.mxu1 %v1539_v48 }
 0x24f   : > { %v1324_v49 = vpop.f32.mrf.mxu1 }
 0x250   : > { %v779_v51 = vmax.f32 %v1324_v49, 0.0 }
 0x251   : > { %v698_v52 = vpop.f32.mrf.mxu1 }
 0x252   : > { %v795_v54 = vadd.f32 %v779_v51, %v763_v50  ;;  %v777_v55 = vmax.f32 %v698_v52, 0.0 }
 0x253   : > { %v1325_v56 = vpop.f32.mrf.mxu1 }
 0x254   : > { %811 = vst [vmem:[#allocation2 + $0x58] sm:$0xff] %v795_v54  ;;  %v793_v58 = vadd.f32 %v777_v55, %v761_v53  ;;  %v780_v59 = vmax.f32 %v1325_v56, 0.0 }
 0x255   : > { %v701_v60 = vpop.f32.mrf.mxu1 }
 0x256   : > { %809 = vst [vmem:[#allocation2 + $0x30] sm:$0xff] %v793_v58  ;;  %v796_v62 = vadd.f32 %v780_v59, %v764_v57  ;;  %v778_v63 = vmax.f32 %v701_v60, 0.0 }
 0x257   : > { %v1328_v0 = vpop.f32.mrf.mxu1 }
 0x258   : > { %812 = vst [vmem:[#allocation2 + $0x18] sm:$0xff] %v796_v62  ;;  %v794_v2 = vadd.f32 %v778_v63, %v762_v61  ;;  %v783_v3 = vmax.f32 %v1328_v0, 0.0 }
 0x259   : > { %v714_v4 = vpop.f32.mrf.mxu1 }
 0x25a   : > { %810 = vst [vmem:[#allocation2] sm:$0xff] %v794_v2  ;;  %v799_v6 = vadd.f32 %v783_v3, %v767_v1  ;;  %v781_v7 = vmax.f32 %v714_v4, 0.0 }
 0x25b   : > { %v1329_v8 = vpop.f32.mrf.mxu1 }
 0x25c   : > { %815 = vst [vmem:[#allocation2 + $0x8] sm:$0xff] %v799_v6  ;;  %v797_v10 = vadd.f32 %v781_v7, %v765_v5  ;;  %v784_v11 = vmax.f32 %v1329_v8, 0.0 }
 0x25d   : > { %v717_v12 = vpop.f32.mrf.mxu1 }
 0x25e   : > { %813 = vst [vmem:[#allocation2 + $0x50] sm:$0xff] %v797_v10  ;;  %v800_v14 = vadd.f32 %v784_v11, %v768_v9  ;;  %v782_v15 = vmax.f32 %v717_v12, 0.0 }
 0x25f   : > { %v1332_v16 = vpop.f32.mrf.mxu1 }
 0x260   : > { %816 = vst [vmem:[#allocation2 + $0x48] sm:$0xff] %v800_v14  ;;  %v798_v18 = vadd.f32 %v782_v15, %v766_v13  ;;  %v787_v19 = vmax.f32 %v1332_v16, 0.0 }
 0x261   : > { %v730_v20 = vpop.f32.mrf.mxu1 }
 0x262   : > { %814 = vst [vmem:[#allocation2 + $0x68] sm:$0xff] %v798_v18  ;;  %v803_v22 = vadd.f32 %v787_v19, %v771_v17  ;;  %v785_v23 = vmax.f32 %v730_v20, 0.0 }
 0x263   : > { %v1333_v24 = vpop.f32.mrf.mxu1 }
 0x264   : > { %819 = vst [vmem:[#allocation2 + $0x10] sm:$0xff] %v803_v22  ;;  %v801_v26 = vadd.f32 %v785_v23, %v769_v21  ;;  %v788_v27 = vmax.f32 %v1333_v24, 0.0 }
 0x265   : > { %v733_v28 = vpop.f32.mrf.mxu1 }
 0x266   : > { %817 = vst [vmem:[#allocation2 + $0x40] sm:$0xff] %v801_v26  ;;  %v804_v30 = vadd.f32 %v788_v27, %v772_v25  ;;  %v786_v31 = vmax.f32 %v733_v28, 0.0 }
 0x267   : > { %v1336_v32 = vpop.f32.mrf.mxu1 }
 0x268   : > { %820 = vst [vmem:[#allocation2 + $0x38] sm:$0xff] %v804_v30  ;;  %v802_v34 = vadd.f32 %v786_v31, %v770_v29  ;;  %v791_v35 = vmax.f32 %v1336_v32, 0.0 }
 0x269   : > { %v746_v36 = vpop.f32.mrf.mxu1 }
 0x26a   : > { %818 = vst [vmem:[#allocation2 + $0x20] sm:$0xff] %v802_v34  ;;  %v807_v38 = vadd.f32 %v791_v35, %v775_v33  ;;  %v789_v39 = vmax.f32 %v746_v36, 0.0 }
 0x26b   : > { %v1337_v40 = vpop.f32.mrf.mxu1 }
 0x26c   : > { %823 = vst [vmem:[#allocation2 + $0x78] sm:$0xff] %v807_v38  ;;  %v805_v42 = vadd.f32 %v789_v39, %v773_v37  ;;  %v792_v43 = vmax.f32 %v1337_v40, 0.0 }
 0x26d   : > { %v749_v44 = vpop.f32.mrf.mxu1 }
 0x26e   : > { %821 = vst [vmem:[#allocation2 + $0x60] sm:$0xff] %v805_v42  ;;  %v808_v46 = vadd.f32 %v792_v43, %v776_v41  ;;  %v790_v47 = vmax.f32 %v749_v44, 0.0  ;;  %828 = sbr.rel (%p1201_p7) target bundleno = 871 (0x367), region = 64 }
 0x270   : > { %824 = vst [vmem:[#allocation2 + $0x28] sm:$0xff] %v808_v46  ;;  %v806_v48 = vadd.f32 %v790_v47, %v774_v45 }
 0x272   : > { %822 = vst [vmem:[#allocation2 + $0x70] sm:$0xff] %v806_v48 }
 0x273   : > { %v860_v49 = vld [vmem:[#allocation9 + $0x78] sm:$0xff]  ;;  %v859_v50 = vld [vmem:[#allocation9 + $0x70] sm:$0xff]  ;;  %v858_v51 = vld [vmem:[#allocation9 + $0x68] sm:$0xff] }
 0x274   : > { %1338 = vmatprep.subr.mxu0 %v860_v49  ;;  %1394 = vmatprep.subr.mxu1 %v860_v49  ;;  %v857_v52 = vld [vmem:[#allocation9 + $0x60] sm:$0xff]  ;;  %v856_v53 = vld [vmem:[#allocation9 + $0x58] sm:$0xff]  ;;  %v855_v54 = vld [vmem:[#allocation9 + $0x50] sm:$0xff] }
 0x275   : > { %1339 = vmatpush3.msra.mxu0 %v860_v49  ;;  %1410 = vmatpush3.msra.mxu1 %v860_v49  ;;  %v854_v55 = vld [vmem:[#allocation9 + $0x48] sm:$0xff]  ;;  %v853_v56 = vld [vmem:[#allocation9 + $0x40] sm:$0xff]  ;;  %v852_v57 = vld [vmem:[#allocation9 + $0x38] sm:$0xff] }
 0x276   : > { %1340 = vmatprep.subr.mxu0 %v859_v50  ;;  %1395 = vmatprep.subr.mxu1 %v859_v50  ;;  %v851_v58 = vld [vmem:[#allocation9 + $0x30] sm:$0xff]  ;;  %v850_v59 = vld [vmem:[#allocation9 + $0x28] sm:$0xff]  ;;  %v849_v60 = vld [vmem:[#allocation9 + $0x20] sm:$0xff] }
 0x277   : > { %1341 = vmatpush3.msra.mxu0 %v859_v50  ;;  %1411 = vmatpush3.msra.mxu1 %v859_v50  ;;  %v848_v61 = vld [vmem:[#allocation9 + $0x18] sm:$0xff]  ;;  %v847_v62 = vld [vmem:[#allocation9 + $0x10] sm:$0xff]  ;;  %v846_v63 = vld [vmem:[#allocation9 + $0x8] sm:$0xff] }
 0x278   : > { %1342 = vmatprep.subr.mxu0 %v858_v51  ;;  %1396 = vmatprep.subr.mxu1 %v858_v51  ;;  %v845_v0 = vld [vmem:[#allocation9] sm:$0xff]  ;;  %v829_v1 = vld [vmem:[#allocation2 + $0x30] sm:$0xff]  ;;  %v831_v5 = vld [vmem:[#allocation2 + $0x58] sm:$0xff] }
 0x279   : > { %1343 = vmatpush3.msra.mxu0 %v858_v51  ;;  %1412 = vmatpush3.msra.mxu1 %v858_v51  ;;  %v837_v2 = vld [vmem:[#allocation2 + $0x40] sm:$0xff]  ;;  %v839_v6 = vld [vmem:[#allocation2 + $0x10] sm:$0xff]  ;;  %v832_v7 = vld [vmem:[#allocation2 + $0x18] sm:$0xff] }
 0x27a   : > { %1344 = vmatprep.subr.mxu0 %v857_v52  ;;  %1397 = vmatprep.subr.mxu1 %v857_v52  ;;  %v830_v3 = vld [vmem:[#allocation2] sm:$0xff]  ;;  %v840_v8 = vld [vmem:[#allocation2 + $0x38] sm:$0xff]  ;;  %v833_v9 = vld [vmem:[#allocation2 + $0x50] sm:$0xff] }
 0x27b   : > { %1345 = vmatpush3.msra.mxu0 %v857_v52  ;;  %1413 = vmatpush3.msra.mxu1 %v857_v52  ;;  %v838_v4 = vld [vmem:[#allocation2 + $0x20] sm:$0xff]  ;;  %v834_v11 = vld [vmem:[#allocation2 + $0x68] sm:$0xff]  ;;  %v842_v12 = vld [vmem:[#allocation2 + $0x70] sm:$0xff] }
 0x27c   : > { %1346 = vmatprep.subr.mxu0 %v856_v53  ;;  %1398 = vmatprep.subr.mxu1 %v856_v53  ;;  %v841_v10 = vld [vmem:[#allocation2 + $0x60] sm:$0xff]  ;;  %v835_v13 = vld [vmem:[#allocation2 + $0x8] sm:$0xff]  ;;  %v843_v14 = vld [vmem:[#allocation2 + $0x78] sm:$0xff] }
 0x27d   : > { %1347 = vmatpush3.msra.mxu0 %v856_v53  ;;  %1414 = vmatpush3.msra.mxu1 %v856_v53  ;;  %v836_v15 = vld [vmem:[#allocation2 + $0x48] sm:$0xff]  ;;  %v1202_v17 = vld [vmem:[%s2012_s4] ss:$0 sm:$0xff] }
 0x27e   : > { %1348 = vmatprep.subr.mxu0 %v855_v54  ;;  %1399 = vmatprep.subr.mxu1 %v855_v54  ;;  %v844_v16 = vld [vmem:[#allocation2 + $0x28] sm:$0xff] }
 0x27f   : > { %1349 = vmatpush3.msra.mxu0 %v855_v54  ;;  %1415 = vmatpush3.msra.mxu1 %v855_v54 }
 0x280   : > { %1350 = vmatprep.subr.mxu0 %v854_v55  ;;  %1400 = vmatprep.subr.mxu1 %v854_v55 }
 0x281   : > { %1351 = vmatpush3.msra.mxu0 %v854_v55  ;;  %1416 = vmatpush3.msra.mxu1 %v854_v55 }
 0x282   : > { %1352 = vmatprep.subr.mxu0 %v853_v56  ;;  %1401 = vmatprep.subr.mxu1 %v853_v56 }
 0x283   : > { %1353 = vmatpush3.msra.mxu0 %v853_v56  ;;  %1417 = vmatpush3.msra.mxu1 %v853_v56 }
 0x284   : > { %1354 = vmatprep.subr.mxu0 %v852_v57  ;;  %1402 = vmatprep.subr.mxu1 %v852_v57 }
 0x285   : > { %1355 = vmatpush3.msra.mxu0 %v852_v57  ;;  %1418 = vmatpush3.msra.mxu1 %v852_v57 }
 0x286   : > { %1356 = vmatprep.subr.mxu0 %v851_v58  ;;  %1403 = vmatprep.subr.mxu1 %v851_v58 }
 0x287   : > { %1357 = vmatpush3.msra.mxu0 %v851_v58  ;;  %1419 = vmatpush3.msra.mxu1 %v851_v58 }
 0x288   : > { %1358 = vmatprep.subr.mxu0 %v850_v59  ;;  %1404 = vmatprep.subr.mxu1 %v850_v59 }
 0x289   : > { %1359 = vmatpush3.msra.mxu0 %v850_v59  ;;  %1420 = vmatpush3.msra.mxu1 %v850_v59 }
 0x28a   : > { %1360 = vmatprep.subr.mxu0 %v849_v60  ;;  %1405 = vmatprep.subr.mxu1 %v849_v60 }
 0x28b   : > { %1361 = vmatpush3.msra.mxu0 %v849_v60  ;;  %1421 = vmatpush3.msra.mxu1 %v849_v60 }
 0x28c   : > { %1362 = vmatprep.subr.mxu0 %v848_v61  ;;  %1406 = vmatprep.subr.mxu1 %v848_v61 }
 0x28d   : > { %1363 = vmatpush3.msra.mxu0 %v848_v61  ;;  %1422 = vmatpush3.msra.mxu1 %v848_v61 }
 0x28e   : > { %1364 = vmatprep.subr.mxu0 %v847_v62  ;;  %1407 = vmatprep.subr.mxu1 %v847_v62 }
 0x28f   : > { %1365 = vmatpush3.msra.mxu0 %v847_v62  ;;  %1423 = vmatpush3.msra.mxu1 %v847_v62 }
 0x290   : > { %1366 = vmatprep.subr.mxu0 %v846_v63  ;;  %1408 = vmatprep.subr.mxu1 %v846_v63 }
 0x291   : > { %1367 = vmatpush3.msra.mxu0 %v846_v63  ;;  %1424 = vmatpush3.msra.mxu1 %v846_v63 }
 0x292   : > { %1368 = vmatprep.subr.mxu0 %v845_v0  ;;  %1409 = vmatprep.subr.mxu1 %v845_v0 }
 0x293   : > { %1369 = vmatpush3.msra.mxu0 %v845_v0  ;;  %1425 = vmatpush3.msra.mxu1 %v845_v0 }
 0x294   : > { %1370 = vmatprep.mubr.f32.mxu0 %v829_v1  ;;  %1382 = vmatprep.mubr.f32.mxu1 %v837_v2 }
 0x295   : > { %1371 = vmatmul.mubr.f32.vlgmr.msra.gmra.mxu0 %v830_v3  ;;  %1383 = vmatmul.mubr.f32.vlgmr.msra.gmra.mxu1 %v838_v4 }
 0x296   : > { %1373 = vmatprep.mubr.f32.mxu0 %v831_v5  ;;  %1385 = vmatprep.mubr.f32.mxu1 %v839_v6 }
 0x299   : > { %1374 = vmatmul.mubr.f32.gmra.mxu0 %v832_v7  ;;  %1386 = vmatmul.mubr.f32.gmra.mxu1 %v840_v8 }
 0x29a   : > { %1376 = vmatprep.mubr.f32.mxu0 %v833_v9  ;;  %1388 = vmatprep.mubr.f32.mxu1 %v841_v10 }
 0x29d   : > { %1377 = vmatmul.mubr.f32.gmra.mxu0 %v834_v11  ;;  %1389 = vmatmul.mubr.f32.gmra.mxu1 %v842_v12 }
 0x29e   : > { %1379 = vmatprep.mubr.f32.mxu0 %v835_v13  ;;  %1391 = vmatprep.mubr.f32.mxu1 %v843_v14 }
 0x2a1   : > { %1380 = vmatmul.mubr.f32.gmra.mxu0 %v836_v15  ;;  %1392 = vmatmul.mubr.f32.gmra.mxu1 %v844_v16 }
 0x355   : > { %v1372_v18 = vpop.f32.mrf.mxu0  ;;  %v1384_v19 = vpop.f32.mrf.mxu1 }
 0x356   : > { %v940_v20 = vadd.f32 %v1372_v18, %v1202_v17  ;;  %v980_v21 = vadd.f32 %v1384_v19, %v1202_v17 }
 0x357   : > { %v934_v22 = vpop.f32.mrf.mxu0  ;;  %v974_v23 = vpop.f32.mrf.mxu1 }
 0x358   : > { %1014 = vst [vmem:[#allocation11 + $0x8] sm:$0xff] %v940_v20  ;;  %1022 = vst [vmem:[#allocation11 + $0x48] sm:$0xff] %v980_v21  ;;  %v935_v24 = vadd.f32 %v1202_v17, %v934_v22  ;;  %v975_v25 = vadd.f32 %v1202_v17, %v974_v23 }
 0x359   : > { %v1375_v26 = vpop.f32.mrf.mxu0  ;;  %v1387_v27 = vpop.f32.mrf.mxu1 }
 0x35a   : > { %1013 = vst [vmem:[#allocation11] sm:$0xff] %v935_v24  ;;  %1021 = vst [vmem:[#allocation11 + $0x40] sm:$0xff] %v975_v25  ;;  %v950_v28 = vadd.f32 %v1375_v26, %v1202_v17  ;;  %v990_v29 = vadd.f32 %v1387_v27, %v1202_v17 }
 0x35b   : > { %v944_v30 = vpop.f32.mrf.mxu0  ;;  %v984_v31 = vpop.f32.mrf.mxu1 }
 0x35c   : > { %1016 = vst [vmem:[#allocation11 + $0x18] sm:$0xff] %v950_v28  ;;  %1024 = vst [vmem:[#allocation11 + $0x58] sm:$0xff] %v990_v29  ;;  %v945_v32 = vadd.f32 %v1202_v17, %v944_v30  ;;  %v985_v33 = vadd.f32 %v1202_v17, %v984_v31 }
 0x35d   : > { %v1378_v34 = vpop.f32.mrf.mxu0  ;;  %v1390_v35 = vpop.f32.mrf.mxu1 }
 0x35e   : > { %1015 = vst [vmem:[#allocation11 + $0x10] sm:$0xff] %v945_v32  ;;  %1023 = vst [vmem:[#allocation11 + $0x50] sm:$0xff] %v985_v33  ;;  %v960_v36 = vadd.f32 %v1378_v34, %v1202_v17  ;;  %v1000_v37 = vadd.f32 %v1390_v35, %v1202_v17 }
 0x35f   : > { %v954_v38 = vpop.f32.mrf.mxu0  ;;  %v994_v39 = vpop.f32.mrf.mxu1 }
 0x360   : > { %1018 = vst [vmem:[#allocation11 + $0x28] sm:$0xff] %v960_v36  ;;  %1026 = vst [vmem:[#allocation11 + $0x68] sm:$0xff] %v1000_v37  ;;  %v955_v40 = vadd.f32 %v1202_v17, %v954_v38  ;;  %v995_v41 = vadd.f32 %v1202_v17, %v994_v39 }
 0x361   : > { %v1381_v42 = vpop.f32.mrf.mxu0  ;;  %v1393_v43 = vpop.f32.mrf.mxu1 }
 0x362   : > { %1017 = vst [vmem:[#allocation11 + $0x20] sm:$0xff] %v955_v40  ;;  %1025 = vst [vmem:[#allocation11 + $0x60] sm:$0xff] %v995_v41  ;;  %v970_v44 = vadd.f32 %v1381_v42, %v1202_v17  ;;  %v1010_v45 = vadd.f32 %v1393_v43, %v1202_v17 }
 0x363   : > { %v964_v46 = vpop.f32.mrf.mxu0  ;;  %v1004_v47 = vpop.f32.mrf.mxu1 }
 0x364   : > { %1020 = vst [vmem:[#allocation11 + $0x38] sm:$0xff] %v970_v44  ;;  %1028 = vst [vmem:[#allocation11 + $0x78] sm:$0xff] %v1010_v45  ;;  %v965_v48 = vadd.f32 %v1202_v17, %v964_v46  ;;  %v1005_v49 = vadd.f32 %v1202_v17, %v1004_v47 }
 0x366   : > { %1019 = vst [vmem:[#allocation11 + $0x30] sm:$0xff] %v965_v48  ;;  %1027 = vst [vmem:[#allocation11 + $0x70] sm:$0xff] %v1005_v49 }
 0x367 PF: > { %p1457_p2 = scmp.eq.s32.totalorder %s1855_s7, 3  ;;  %s1747_s25 = smov [#allocation11]  }
 0x368   : > { %s1038_s11 = sshll.u32 %s1747_s25, 4  ;;  %s1039_s11 = int_to_ptr.vmem [resolvable:$true] %s1038_s11 }
 0x369   : > { %s1650_s12 = scalar_lea.vmem %s1039_s11, 2048  ;;  %p1657_p4 = scmp.lt.s32.totalorder %s1039_s11, %s1039_s11 }
 0x36a   : > { %p1651_p5 = scmp.ne.s32.totalorder %s1039_s11, %s1650_s12  ;;  %p1658_p10 = scmp.lt.s32.totalorder %s1650_s12, %s1650_s12 }
 0x36c   : > { %p1652_p8 = pnand %p1651_p5, %p1457_p2  ;;  %p1659_p9 = por %p1658_p10, %p1657_p4 }
 0x36e   : > { %p1653_p3 = pneg %p1652_p8 }
 0x370   : > { %p1660_p11 = pnand %p1659_p9, %p1653_p3 }
 0x372   : > { %1663 = shalt.err (!%p1660_p11)
}
 0x373   : > { %s1748_s1 = smov 128   ;;  %s1749_s24 = smov 8  }
 0x374   : > { %1437 = dma.vmem_to_hbm [thread:$0]  (%p1457_p2), %s1039_s11, 2048, %s2013_s5, [#allocation5], %s1748_s1, %s1748_s1, %s1749_s24  }
 0x375   : > { %1711 = dma.done.wait (%p1457_p2), [#allocation5], 2048  }
 0x376   : > { %1713 = vsyncadd (%p1457_p2), [#allocation5], 4294965248 }
 0x377 PF: > { %s23_s23 = sadd.s32 1, %s1736_s23   ;;  %s2031_s16 = sld [smem:[#allocation16_spill]] }
 0x378   : > { %p20_p12 = scmp.ge.s32.totalorder %s23_s23, 6   ;;  %s2032_s18 = smov %s1720_s19 }
 0x379   : > { %s2033_s19 = smov %s1724_s20  ;;  %s2034_s20 = smov %s1833_s6 }
 0x37a   : > { %s2035_s21 = smov %s1732_s22  ;;  %22 = sbr.rel (!%p20_p12) target bundleno = 11 (0xb), region = 114 }
 0x37d   : > { %s2036_s22 = smov %s2031_s16 }
 0x37f   :  { %1054 = vsyncpa [#allocation4], 1 }
 0x380   :  { %1056 = vsyncpa [#allocation4 + $0x1], 1 }
 0x381   :  { %1057 = vsyncpa [#allocation7], 1 }
 0x382   :  { %1059 = vsyncpa [#allocation7 + $0x1], 1 }
 0x383   :  { %1060 = vsyncpa [#allocation10], 1 }
 0x384   :  { %1061 = vsyncpa [#allocation5], 1 }
 0x385   :  { %1063 = vsyncpa [#allocation5 + $0x1], 1 }

</bundles_post_ra>
